<compile_context>
chip_gen: v7x
topology: tpu7x:2x2x1
jax: 0.10.0
libtpu: 0.0.40
codegen_flags: <defaults>
</compile_context>

<pallas_src>
import functools

import jax
import jax.numpy as jnp
import numpy as np
from jax.experimental import pallas as pl
from jax.experimental.pallas import tpu as pltpu

EPS = 1e-5
_HALO_BLK = 16  # neighbour-row (halo) blocks fetched at bf16 sublane-tile granularity


# --------------------------------------------------------------------------------------
# Tiling / VMEM heuristics
# --------------------------------------------------------------------------------------
def _vmem_limit_bytes():
    """Scoped VMEM budget per generation: ~3/4 of physical, capped at 100 MiB
    (~96 MiB on v5e/v6e's 128 MiB, 48 MiB on v7x's 64 MiB)."""
    try:
        cap = pltpu.get_tpu_info().vmem_capacity_bytes
    except Exception:
        cap = 64 * 1024 * 1024
    return int(min(cap * 3 // 4, 100 * 1024 * 1024))


def _pick_tile_rows(h, row_bytes, budget_bytes):
    """Row-tile TH: whole image if it fits the per-stream budget; otherwise the largest
    multiple-of-16 divisor of H that fits (16 keeps bf16 sublane packing + halo blocks legal)."""
    if h * row_bytes <= budget_bytes or h % 16 != 0:
        return h
    divisors = [d for d in range(16, h, 16) if h % d == 0]
    fitting = [d for d in divisors if d * row_bytes <= budget_bytes]
    if fitting:
        return max(fitting)
    return min(divisors) if divisors else h


# --------------------------------------------------------------------------------------
# Kernel
# --------------------------------------------------------------------------------------
def _conv_rows_kernel(*refs, th, apply_act, has_halo):
    """One (image n, row-tile i) grid step: [BN+ReLU ->] 3x3 conv -> raw out + partial stats.

    Ref order (lane-merged layout, last dim = W*C):
      [up (1,16,L)], xc (1,TH,L), [dn (1,16,L)], [s (1,L), t (1,L)], w (3,L,Lo),
      y (1,TH,Lo) bf16, st (1,1,2,Lo) f32
    """
    idx = 0
    up_ref = dn_ref = s_ref = t_ref = None
    if has_halo:
        up_ref = refs[idx]; idx += 1
    xc_ref = refs[idx]; idx += 1
    if has_halo:
        dn_ref = refs[idx]; idx += 1
    if apply_act:
        s_ref, t_ref = refs[idx], refs[idx + 1]; idx += 2
    w_ref, y_ref, st_ref = refs[idx], refs[idx + 1], refs[idx + 2]

    xc = xc_ref[0].astype(jnp.float32)                           # (TH, L)
    lanes = xc.shape[-1]
    if has_halo:
        top = up_ref[0][_HALO_BLK - 1:, :].astype(jnp.float32)   # row just above the tile
        bot = dn_ref[0][:1, :].astype(jnp.float32)               # row just below the tile
    else:
        # A single tile covers the whole image: the H-padding rows are plain zeros
        # (zeros of the *post-activation* conv input, which is exactly what zero-pad means).
        top = jnp.zeros((1, lanes), jnp.float32)
        bot = jnp.zeros((1, lanes), jnp.float32)

    if apply_act:                                                # fused BN+ReLU on the conv input
        s = s_ref[...]
        t = t_ref[...]
        xc = jnp.maximum(xc * s + t, 0.0)
        if has_halo:
            top = jnp.maximum(top * s + t, 0.0)
            bot = jnp.maximum(bot * s + t, 0.0)

    if has_halo:
        i = pl.program_id(1)
        nt = pl.num_programs(1)
        # H zero-padding: halo rows outside the image are zero *after* the activation.
        top = jnp.where(i == 0, 0.0, top)
        bot = jnp.where(i == nt - 1, 0.0, bot)

    # Row h of the kh=0 / kh=2 taps needs input row h-1 / h+1: cheap XLU roll + masked
    # select of the halo row (no sublane-offset slice materialization, no concat).
    rows = jax.lax.broadcasted_iota(jnp.int32, (th, 1), 0)
    x_up = jnp.where(rows == 0, top, pltpu.roll(xc, shift=1, axis=0))            # row h-1
    x_dn = jnp.where(rows == th - 1, bot, pltpu.roll(xc, shift=th - 1, axis=0))  # row h+1

    # Three MXU matmuls with K = W*Cin (block-banded weights fold the kw taps and the W
    # zero padding); bf16 operands, f32 accumulation.
    acc = jnp.dot(x_up.astype(jnp.bfloat16), w_ref[0], preferred_element_type=jnp.float32)
    acc += jnp.dot(xc.astype(jnp.bfloat16), w_ref[1], preferred_element_type=jnp.float32)
    acc += jnp.dot(x_dn.astype(jnp.bfloat16), w_ref[2], preferred_element_type=jnp.float32)

    y_ref[0] = acc.astype(y_ref.dtype)                # bf16 store halves HBM writeback
    # Per-tile partial BN statistics from the f32 accumulator, one 2-sublane store.
    st_ref[0, 0] = jnp.concatenate(
        [jnp.sum(acc, axis=0, keepdims=True),
         jnp.sum(acc * acc, axis=0, keepdims=True)], axis=0)


# --------------------------------------------------------------------------------------
# Phase wrapper
# --------------------------------------------------------------------------------------
def _conv_phase(x_m, w_banded, scale_shift, *, th, vmem_limit):
    """Tiled conv phase: x_m (N, H, W*Cin) -> (bf16 conv out (N, H, W*Cout), f32 partial stats)."""
    n_im, h, l_in = x_m.shape
    l_out = w_banded.shape[-1]
    assert h % th == 0
    nt = h // th
    has_halo = nt > 1
    apply_act = scale_shift is not None

    inputs, in_specs = [], []
    if has_halo:
        nb = th // _HALO_BLK          # halo blocks per tile
        nbh = h // _HALO_BLK          # halo blocks per image
        # 16-row block just above the tile (clamped at the top edge; zeroed in-kernel)
        in_specs.append(pl.BlockSpec((1, _HALO_BLK, l_in),
                                     lambda n, i: (n, jnp.maximum(i * nb - 1, 0), 0)))
        inputs.append(x_m)
    # the TH center rows
    in_specs.append(pl.BlockSpec((1, th, l_in), lambda n, i: (n, i, 0)))
    inputs.append(x_m)
    if has_halo:
        # 16-row block just below the tile (clamped at the bottom edge; zeroed in-kernel)
        in_specs.append(pl.BlockSpec((1, _HALO_BLK, l_in),
                                     lambda n, i: (n, jnp.minimum((i + 1) * nb, nbh - 1), 0)))
        inputs.append(x_m)
    if apply_act:
        s, t = scale_shift            # fused BN scale/shift for the *input* of this conv
        in_specs += [pl.BlockSpec((1, l_in), lambda n, i: (0, 0)),
                     pl.BlockSpec((1, l_in), lambda n, i: (0, 0))]
        inputs += [s, t]
    # Banded conv weights: constant block index -> resident across the grid.
    in_specs.append(pl.BlockSpec(w_banded.shape, lambda n, i: (0, 0, 0)))
    inputs.append(w_banded)

    out_specs = [pl.BlockSpec((1, th, l_out), lambda n, i: (n, i, 0)),
                 pl.BlockSpec((1, 1, 2, l_out), lambda n, i: (n, i, 0, 0))]
    out_shape = [jax.ShapeDtypeStruct((n_im, h, l_out), jnp.bfloat16),
                 jax.ShapeDtypeStruct((n_im, nt, 2, l_out), jnp.float32)]

    kern = functools.partial(_conv_rows_kernel, th=th, apply_act=apply_act, has_halo=has_halo)
    return pl.pallas_call(
        kern,
        grid=(n_im, nt),
        in_specs=in_specs,
        out_specs=out_specs,
        out_shape=out_shape,
        compiler_params=pltpu.CompilerParams(
            dimension_semantics=("parallel", "parallel"),   # megacore sharding on v7x
            vmem_limit_bytes=vmem_limit),
    )(*inputs)


def _bn_fold(stats, gamma, beta, count, width, c):
    """Per-tile [sum, sumsq] -> fused per-lane (scale, shift) so BN+affine == y*scale + shift."""
    s = stats[:, :, 0, :].reshape(-1, width, c).sum(axis=(0, 1))
    ss = stats[:, :, 1, :].reshape(-1, width, c).sum(axis=(0, 1))
    mean = s / count
    var = jnp.maximum(ss / count - mean * mean, 0.0)       # biased var, PyTorch training mode
    scale = gamma * jax.lax.rsqrt(var + EPS)
    shift = beta - mean * scale
    # back to the lane-merged (W*C) layout: lane w*C + c -> channel c
    return jnp.tile(scale, width)[None, :], jnp.tile(shift, width)[None, :]


@jax.jit
def double_conv(x_nchw, w1_banded, g1, b1, w2_banded, g2, b2):
    """x_nchw: (N, Cin, H, W) f32.  Returns (N, Cout, H, W) f32."""
    n_im, c_in, h, w = x_nchw.shape
    c_mid = w1_banded.shape[-1] // w
    c_out = w2_banded.shape[-1] // w

    # Layout prep: NCHW -> lane-merged (N, H, W*Cin) bf16; one fused XLA transpose+cast.
    # TODO(synk): the surrounding model should carry this layout end-to-end.
    x_m = jnp.transpose(x_nchw, (0, 2, 3, 1)).reshape(n_im, h, w * c_in).astype(jnp.bfloat16)

    vmem_limit = _vmem_limit_bytes()
    row_bytes = 4 * w * max(c_in, c_mid, c_out)            # worst-case per-row footprint
    th = _pick_tile_rows(h, row_bytes, vmem_limit // 16)

    # phase A: conv1 -> bf16 y1 + partial BN1 stats
    y1_raw, st1 = _conv_phase(x_m, w1_banded, None, th=th, vmem_limit=vmem_limit)
    s1, t1 = _bn_fold(st1, g1, b1, n_im * h * w, w, c_mid)

    # phase B: BN1+ReLU fused onto conv2's operand path; conv2 -> bf16 y2 + partial BN2 stats
    y2_raw, st2 = _conv_phase(y1_raw, w2_banded, (s1, t1), th=th, vmem_limit=vmem_limit)
    s2, t2 = _bn_fold(st2, g2, b2, n_im * h * w, w, c_out)

    # Final BN2 + ReLU: trivially mem-bound affine, fused by XLA into the NCHW transpose
    # (a tiny-block pallas_call here was pure launch overhead — perf review).
    out_m = jnp.maximum(y2_raw.astype(jnp.float32) * s2 + t2, 0.0)
    return jnp.transpose(out_m.reshape(n_im, h, w, c_out), (0, 3, 1, 2))


# --------------------------------------------------------------------------------------
# Host-side weight preparation
# --------------------------------------------------------------------------------------
def _banded_conv_matrix(k_oihw, width):
    """(Cout, Cin, 3, 3) PyTorch conv weight -> (3, W*Cin, W*Cout) block-banded bf16 matrices.

    B[dh, wp*Cin + ci, w*Cout + co] = k[co, ci, dh, dw] for wp = w + dw - 1 in [0, W);
    out-of-range taps are absent, which *is* the conv's zero padding along W.
    """
    k = np.asarray(k_oihw, dtype=np.float32)
    c_out, c_in = k.shape[0], k.shape[1]
    b = np.zeros((3, width * c_in, width * c_out), np.float32)
    for dh in range(3):
        for dw in range(3):
            blk = k[:, :, dh, dw].T                      # (Cin, Cout)
            for ww in range(width):
                wp = ww + dw - 1
                if 0 <= wp < width:
                    b[dh, wp * c_in:(wp + 1) * c_in, ww * c_out:(ww + 1) * c_out] = blk
    return jnp.asarray(b, dtype=jnp.bfloat16)            # bf16 MXU operands


# --------------------------------------------------------------------------------------
# Pure-JAX reference (f32), PyTorch training-mode BN semantics
# --------------------------------------------------------------------------------------
def _ref_double_conv(x, w1_oihw, w2_oihw, g1, b1, g2, b2):
    def conv(x, w):
        return jax.lax.conv_general_dilated(
            x, w, (1, 1), [(1, 1), (1, 1)],
            dimension_numbers=('NCHW', 'OIHW', 'NCHW'))

    def bn_relu(x, g, b):
        mean = jnp.mean(x, axis=(0, 2, 3), keepdims=True)
        var = jnp.var(x, axis=(0, 2, 3), keepdims=True)   # biased, like PyTorch train mode
        y = (x - mean) * jax.lax.rsqrt(var + EPS)
        y = y * g.reshape(1, -1, 1, 1) + b.reshape(1, -1, 1, 1)
        return jnp.maximum(y, 0.0)

    y = bn_relu(conv(x, w1_oihw), g1, b1)
    return bn_relu(conv(y, w2_oihw), g2, b2)


if __name__ == "__main__":
    # Small shapes consistent with the module: N=2, Cin=4, Cmid=Cout=8, 16x16 spatial.
    N, Cin, Cmid, Cout, H, W = 2, 4, 8, 8, 16, 16

    key = jax.random.PRNGKey(0)
    kx, kw1, kw2 = jax.random.split(key, 3)
    x = jax.random.normal(kx, (N, Cin, H, W), jnp.float32)

    # Conv weights: He-style scaled normals; BN affine at nn.BatchNorm2d defaults (1, 0).
    w1_oihw = jax.random.normal(kw1, (Cmid, Cin, 3, 3), jnp.float32) * (2.0 / (Cin * 9)) ** 0.5
    w2_oihw = jax.random.normal(kw2, (Cout, Cmid, 3, 3), jnp.float32) * (2.0 / (Cmid * 9)) ** 0.5
    g1, b1 = jnp.ones((Cmid,), jnp.float32), jnp.zeros((Cmid,), jnp.float32)
    g2, b2 = jnp.ones((Cout,), jnp.float32), jnp.zeros((Cout,), jnp.float32)

    B1 = _banded_conv_matrix(w1_oihw, W)
    B2 = _banded_conv_matrix(w2_oihw, W)

    out = jax.block_until_ready(double_conv(x, B1, g1, b1, B2, g2, b2))

    ref = jax.block_until_ready(_ref_double_conv(x, w1_oihw, w2_oihw, g1, b1, g2, b2))
    # bf16 MXU operands + bf16 intermediate storage (f32 accumulation / BN math) vs a
    # pure-f32 reference -> ~1% drift; intentional.
    np.testing.assert_allclose(np.asarray(out), np.asarray(ref), rtol=3e-2, atol=3e-2)

    print("KERNEL_OK")
</pallas_src>

<mosaic_0001>
module attributes {stable_mosaic.version = 11 : i64} {
  func.func @_conv_rows_kernel(%arg0: i32, %arg1: i32, %arg2: memref<1x16x64xbf16, #tpu.memory_space<vmem>>, %arg3: memref<3x64x128xbf16, #tpu.memory_space<vmem>>, %arg4: memref<1x16x128xbf16, #tpu.memory_space<vmem>>, %arg5: memref<1x1x2x128xf32, #tpu.memory_space<vmem>>) attributes {dimension_semantics = [#tpu.dimension_semantics<parallel>, #tpu.dimension_semantics<parallel>], iteration_bounds = array<i64: 2, 1>, scalar_prefetch = 0 : i64, scratch_operands = 0 : i64, tpu.core_type = #tpu.core_type<tc>, window_params = [{transform_indices = @transform_0, window_bounds = array<i64: 1, 16, 64>}, {pipeline_mode = #tpu.pipeline_mode<synchronous>, transform_indices = @transform_1, window_bounds = array<i64: 3, 64, 128>}, {transform_indices = @transform_2, window_bounds = array<i64: 1, 16, 128>}, {transform_indices = @transform_3, window_bounds = array<i64: 1, 1, 2, 128>}]} {
    %c0 = arith.constant 0 : index
    %c0_0 = arith.constant 0 : index
    %c0_1 = arith.constant 0 : index
    %0 = vector.load %arg2[%c0, %c0_0, %c0_1] : memref<1x16x64xbf16, #tpu.memory_space<vmem>>, vector<1x16x64xbf16>
    %1 = vector.shape_cast %0 : vector<1x16x64xbf16> to vector<16x64xbf16>
    %2 = arith.extf %1 : vector<16x64xbf16> to vector<16x64xf32>
    %cst = arith.constant 0.000000e+00 : f32
    %3 = vector.broadcast %cst : f32 to vector<1x64xf32>
    %cst_2 = arith.constant 0.000000e+00 : f32
    %4 = vector.broadcast %cst_2 : f32 to vector<1x64xf32>
    %5 = tpu.iota {dimensions = array<i32: 0>} : vector<16x1xi32>
    %c0_i32 = arith.constant 0 : i32
    %6 = vector.broadcast %c0_i32 : i32 to vector<16x1xi32>
    %7 = arith.cmpi eq, %5, %6 : vector<16x1xi32>
    %c1_i32 = arith.constant 1 : i32
    %8 = tpu.dynamic_rotate %2 by %c1_i32 dim 0 : vector<16x64xf32>, i32 -> vector<16x64xf32>
    %9 = vector.shape_cast %7 : vector<16x1xi1> to vector<16x1xi1>
    %10 = vector.broadcast %9 : vector<16x1xi1> to vector<16x64xi1>
    %11 = vector.shape_cast %3 : vector<1x64xf32> to vector<1x64xf32>
    %12 = vector.broadcast %11 : vector<1x64xf32> to vector<16x64xf32>
    %13 = arith.select %10, %12, %8 : vector<16x64xi1>, vector<16x64xf32>
    %c15_i32 = arith.constant 15 : i32
    %14 = vector.broadcast %c15_i32 : i32 to vector<16x1xi32>
    %15 = arith.cmpi eq, %5, %14 : vector<16x1xi32>
    %c15_i32_3 = arith.constant 15 : i32
    %16 = tpu.dynamic_rotate %2 by %c15_i32_3 dim 0 : vector<16x64xf32>, i32 -> vector<16x64xf32>
    %17 = vector.shape_cast %15 : vector<16x1xi1> to vector<16x1xi1>
    %18 = vector.broadcast %17 : vector<16x1xi1> to vector<16x64xi1>
    %19 = vector.shape_cast %4 : vector<1x64xf32> to vector<1x64xf32>
    %20 = vector.broadcast %19 : vector<1x64xf32> to vector<16x64xf32>
    %21 = arith.select %18, %20, %16 : vector<16x64xi1>, vector<16x64xf32>
    %22 = arith.truncf %13 : vector<16x64xf32> to vector<16x64xbf16>
    %c0_4 = arith.constant 0 : index
    %c0_5 = arith.constant 0 : index
    %c0_6 = arith.constant 0 : index
    %23 = vector.load %arg3[%c0_4, %c0_5, %c0_6] : memref<3x64x128xbf16, #tpu.memory_space<vmem>>, vector<1x64x128xbf16>
    %24 = vector.shape_cast %23 : vector<1x64x128xbf16> to vector<64x128xbf16>
    %cst_7 = arith.constant dense<0.000000e+00> : vector<16x128xf32>
    %25 = tpu.matmul %22, %24, %cst_7 {dimension_numbers = #tpu.dot_dimension_numbers<[1], [0], [0], [1], [0, 0, 1, 1], [], []>} : vector<16x64xbf16>, vector<64x128xbf16>, vector<16x128xf32> -> vector<16x128xf32>
    %26 = arith.truncf %2 : vector<16x64xf32> to vector<16x64xbf16>
    %c1 = arith.constant 1 : index
    %c0_8 = arith.constant 0 : index
    %c0_9 = arith.constant 0 : index
    %27 = vector.load %arg3[%c1, %c0_8, %c0_9] : memref<3x64x128xbf16, #tpu.memory_space<vmem>>, vector<1x64x128xbf16>
    %28 = vector.shape_cast %27 : vector<1x64x128xbf16> to vector<64x128xbf16>
    %cst_10 = arith.constant dense<0.000000e+00> : vector<16x128xf32>
    %29 = tpu.matmul %26, %28, %cst_10 {dimension_numbers = #tpu.dot_dimension_numbers<[1], [0], [0], [1], [0, 0, 1, 1], [], []>} : vector<16x64xbf16>, vector<64x128xbf16>, vector<16x128xf32> -> vector<16x128xf32>
    %30 = arith.addf %25, %29 : vector<16x128xf32>
    %31 = arith.truncf %21 : vector<16x64xf32> to vector<16x64xbf16>
    %c2 = arith.constant 2 : index
    %c0_11 = arith.constant 0 : index
    %c0_12 = arith.constant 0 : index
    %32 = vector.load %arg3[%c2, %c0_11, %c0_12] : memref<3x64x128xbf16, #tpu.memory_space<vmem>>, vector<1x64x128xbf16>
    %33 = vector.shape_cast %32 : vector<1x64x128xbf16> to vector<64x128xbf16>
    %cst_13 = arith.constant dense<0.000000e+00> : vector<16x128xf32>
    %34 = tpu.matmul %31, %33, %cst_13 {dimension_numbers = #tpu.dot_dimension_numbers<[1], [0], [0], [1], [0, 0, 1, 1], [], []>} : vector<16x64xbf16>, vector<64x128xbf16>, vector<16x128xf32> -> vector<16x128xf32>
    %35 = arith.addf %30, %34 : vector<16x128xf32>
    %36 = arith.truncf %35 : vector<16x128xf32> to vector<16x128xbf16>
    %c0_14 = arith.constant 0 : index
    %c0_15 = arith.constant 0 : index
    %c0_16 = arith.constant 0 : index
    %37 = vector.load %arg4[%c0_14, %c0_15, %c0_16] : memref<1x16x128xbf16, #tpu.memory_space<vmem>>, vector<1x16x128xbf16>
    %38 = vector.shape_cast %37 : vector<1x16x128xbf16> to vector<16x128xbf16>
    %39 = vector.shape_cast %36 : vector<16x128xbf16> to vector<1x16x128xbf16>
    tpu.vector_store %arg4[%c0_14, %c0_15, %c0_16], %39 {strides = array<i32>} : memref<1x16x128xbf16, #tpu.memory_space<vmem>>, vector<1x16x128xbf16>,
    %cst_17 = arith.constant dense<0.000000e+00> : vector<128xf32>
    %40 = vector.multi_reduction <add>, %35, %cst_17 [0] : vector<16x128xf32> to vector<128xf32>
    %41 = vector.shape_cast %40 : vector<128xf32> to vector<1x128xf32>
    %42 = arith.mulf %35, %35 : vector<16x128xf32>
    %cst_18 = arith.constant dense<0.000000e+00> : vector<128xf32>
    %43 = vector.multi_reduction <add>, %42, %cst_18 [0] : vector<16x128xf32> to vector<128xf32>
    %44 = vector.shape_cast %43 : vector<128xf32> to vector<1x128xf32>
    %45 = tpu.concatenate %41, %44 in 0 : vector<1x128xf32>, vector<1x128xf32> -> vector<2x128xf32>
    %c0_19 = arith.constant 0 : index
    %c0_20 = arith.constant 0 : index
    %c0_21 = arith.constant 0 : index
    %c0_22 = arith.constant 0 : index
    %46 = vector.load %arg5[%c0_19, %c0_20, %c0_21, %c0_22] : memref<1x1x2x128xf32, #tpu.memory_space<vmem>>, vector<1x1x2x128xf32>
    %47 = vector.shape_cast %46 : vector<1x1x2x128xf32> to vector<2x128xf32>
    %48 = vector.shape_cast %45 : vector<2x128xf32> to vector<1x1x2x128xf32>
    tpu.vector_store %arg5[%c0_19, %c0_20, %c0_21, %c0_22], %48 {strides = array<i32>} : memref<1x1x2x128xf32, #tpu.memory_space<vmem>>, vector<1x1x2x128xf32>,
    return
  }
  func.func @transform_0(%arg0: i32, %arg1: i32) -> (i32, i32, i32) {
    %c0_i32 = arith.constant 0 : i32
    %c0_i32_0 = arith.constant 0 : i32
    return %arg0, %arg1, %c0_i32 : i32, i32, i32
  }
  func.func @transform_1(%arg0: i32, %arg1: i32) -> (i32, i32, i32) {
    %c0_i32 = arith.constant 0 : i32
    %c0_i32_0 = arith.constant 0 : i32
    %c0_i32_1 = arith.constant 0 : i32
    %c0_i32_2 = arith.constant 0 : i32
    return %c0_i32, %c0_i32_0, %c0_i32_1 : i32, i32, i32
  }
  func.func @transform_2(%arg0: i32, %arg1: i32) -> (i32, i32, i32) {
    %c0_i32 = arith.constant 0 : i32
    %c0_i32_0 = arith.constant 0 : i32
    return %arg0, %arg1, %c0_i32 : i32, i32, i32
  }
  func.func @transform_3(%arg0: i32, %arg1: i32) -> (i32, i32, i32, i32) {
    %c0_i32 = arith.constant 0 : i32
    %c0_i32_0 = arith.constant 0 : i32
    %c0_i32_1 = arith.constant 0 : i32
    return %arg0, %arg1, %c0_i32, %c0_i32_0 : i32, i32, i32, i32
  }
}

module attributes {stable_mosaic.version = 11 : i64} {
  func.func @_conv_rows_kernel(%arg0: i32, %arg1: i32, %arg2: memref<1x16x128xbf16, #tpu.memory_space<vmem>>, %arg3: memref<1x128xf32, #tpu.memory_space<vmem>>, %arg4: memref<1x128xf32, #tpu.memory_space<vmem>>, %arg5: memref<3x128x128xbf16, #tpu.memory_space<vmem>>, %arg6: memref<1x16x128xbf16, #tpu.memory_space<vmem>>, %arg7: memref<1x1x2x128xf32, #tpu.memory_space<vmem>>) attributes {dimension_semantics = [#tpu.dimension_semantics<parallel>, #tpu.dimension_semantics<parallel>], iteration_bounds = array<i64: 2, 1>, scalar_prefetch = 0 : i64, scratch_operands = 0 : i64, tpu.core_type = #tpu.core_type<tc>, window_params = [{transform_indices = @transform_0, window_bounds = array<i64: 1, 16, 128>}, {pipeline_mode = #tpu.pipeline_mode<synchronous>, transform_indices = @transform_1, window_bounds = array<i64: 1, 128>}, {pipeline_mode = #tpu.pipeline_mode<synchronous>, transform_indices = @transform_2, window_bounds = array<i64: 1, 128>}, {pipeline_mode = #tpu.pipeline_mode<synchronous>, transform_indices = @transform_3, window_bounds = array<i64: 3, 128, 128>}, {transform_indices = @transform_4, window_bounds = array<i64: 1, 16, 128>}, {transform_indices = @transform_5, window_bounds = array<i64: 1, 1, 2, 128>}]} {
    %c0 = arith.constant 0 : index
    %c0_0 = arith.constant 0 : index
    %c0_1 = arith.constant 0 : index
    %0 = vector.load %arg2[%c0, %c0_0, %c0_1] : memref<1x16x128xbf16, #tpu.memory_space<vmem>>, vector<1x16x128xbf16>
    %1 = vector.shape_cast %0 : vector<1x16x128xbf16> to vector<16x128xbf16>
    %2 = arith.extf %1 : vector<16x128xbf16> to vector<16x128xf32>
    %cst = arith.constant 0.000000e+00 : f32
    %3 = vector.broadcast %cst : f32 to vector<1x128xf32>
    %cst_2 = arith.constant 0.000000e+00 : f32
    %4 = vector.broadcast %cst_2 : f32 to vector<1x128xf32>
    %c0_3 = arith.constant 0 : index
    %c0_4 = arith.constant 0 : index
    %5 = vector.load %arg3[%c0_3, %c0_4] : memref<1x128xf32, #tpu.memory_space<vmem>>, vector<1x128xf32>
    %c0_5 = arith.constant 0 : index
    %c0_6 = arith.constant 0 : index
    %6 = vector.load %arg4[%c0_5, %c0_6] : memref<1x128xf32, #tpu.memory_space<vmem>>, vector<1x128xf32>
    %7 = vector.broadcast %5 : vector<1x128xf32> to vector<16x128xf32>
    %8 = arith.mulf %2, %7 : vector<16x128xf32>
    %9 = vector.broadcast %6 : vector<1x128xf32> to vector<16x128xf32>
    %10 = arith.addf %8, %9 : vector<16x128xf32>
    %cst_7 = arith.constant 0.000000e+00 : f32
    %11 = vector.broadcast %cst_7 : f32 to vector<16x128xf32>
    %12 = arith.maximumf %10, %11 : vector<16x128xf32>
    %13 = tpu.iota {dimensions = array<i32: 0>} : vector<16x1xi32>
    %c0_i32 = arith.constant 0 : i32
    %14 = vector.broadcast %c0_i32 : i32 to vector<16x1xi32>
    %15 = arith.cmpi eq, %13, %14 : vector<16x1xi32>
    %c1_i32 = arith.constant 1 : i32
    %16 = tpu.dynamic_rotate %12 by %c1_i32 dim 0 : vector<16x128xf32>, i32 -> vector<16x128xf32>
    %17 = vector.shape_cast %15 : vector<16x1xi1> to vector<16x1xi1>
    %18 = vector.broadcast %17 : vector<16x1xi1> to vector<16x128xi1>
    %19 = vector.shape_cast %3 : vector<1x128xf32> to vector<1x128xf32>
    %20 = vector.broadcast %19 : vector<1x128xf32> to vector<16x128xf32>
    %21 = arith.select %18, %20, %16 : vector<16x128xi1>, vector<16x128xf32>
    %c15_i32 = arith.constant 15 : i32
    %22 = vector.broadcast %c15_i32 : i32 to vector<16x1xi32>
    %23 = arith.cmpi eq, %13, %22 : vector<16x1xi32>
    %c15_i32_8 = arith.constant 15 : i32
    %24 = tpu.dynamic_rotate %12 by %c15_i32_8 dim 0 : vector<16x128xf32>, i32 -> vector<16x128xf32>
    %25 = vector.shape_cast %23 : vector<16x1xi1> to vector<16x1xi1>
    %26 = vector.broadcast %25 : vector<16x1xi1> to vector<16x128xi1>
    %27 = vector.shape_cast %4 : vector<1x128xf32> to vector<1x128xf32>
    %28 = vector.broadcast %27 : vector<1x128xf32> to vector<16x128xf32>
    %29 = arith.select %26, %28, %24 : vector<16x128xi1>, vector<16x128xf32>
    %30 = arith.truncf %21 : vector<16x128xf32> to vector<16x128xbf16>
    %c0_9 = arith.constant 0 : index
    %c0_10 = arith.constant 0 : index
    %c0_11 = arith.constant 0 : index
    %31 = vector.load %arg5[%c0_9, %c0_10, %c0_11] : memref<3x128x128xbf16, #tpu.memory_space<vmem>>, vector<1x128x128xbf16>
    %32 = vector.shape_cast %31 : vector<1x128x128xbf16> to vector<128x128xbf16>
    %cst_12 = arith.constant dense<0.000000e+00> : vector<16x128xf32>
    %33 = tpu.matmul %30, %32, %cst_12 {dimension_numbers = #tpu.dot_dimension_numbers<[1], [0], [0], [1], [0, 0, 1, 1], [], []>} : vector<16x128xbf16>, vector<128x128xbf16>, vector<16x128xf32> -> vector<16x128xf32>
    %34 = arith.truncf %12 : vector<16x128xf32> to vector<16x128xbf16>
    %c1 = arith.constant 1 : index
    %c0_13 = arith.constant 0 : index
    %c0_14 = arith.constant 0 : index
    %35 = vector.load %arg5[%c1, %c0_13, %c0_14] : memref<3x128x128xbf16, #tpu.memory_space<vmem>>, vector<1x128x128xbf16>
    %36 = vector.shape_cast %35 : vector<1x128x128xbf16> to vector<128x128xbf16>
    %cst_15 = arith.constant dense<0.000000e+00> : vector<16x128xf32>
    %37 = tpu.matmul %34, %36, %cst_15 {dimension_numbers = #tpu.dot_dimension_numbers<[1], [0], [0], [1], [0, 0, 1, 1], [], []>} : vector<16x128xbf16>, vector<128x128xbf16>, vector<16x128xf32> -> vector<16x128xf32>
    %38 = arith.addf %33, %37 : vector<16x128xf32>
    %39 = arith.truncf %29 : vector<16x128xf32> to vector<16x128xbf16>
    %c2 = arith.constant 2 : index
    %c0_16 = arith.constant 0 : index
    %c0_17 = arith.constant 0 : index
    %40 = vector.load %arg5[%c2, %c0_16, %c0_17] : memref<3x128x128xbf16, #tpu.memory_space<vmem>>, vector<1x128x128xbf16>
    %41 = vector.shape_cast %40 : vector<1x128x128xbf16> to vector<128x128xbf16>
    %cst_18 = arith.constant dense<0.000000e+00> : vector<16x128xf32>
    %42 = tpu.matmul %39, %41, %cst_18 {dimension_numbers = #tpu.dot_dimension_numbers<[1], [0], [0], [1], [0, 0, 1, 1], [], []>} : vector<16x128xbf16>, vector<128x128xbf16>, vector<16x128xf32> -> vector<16x128xf32>
    %43 = arith.addf %38, %42 : vector<16x128xf32>
    %44 = arith.truncf %43 : vector<16x128xf32> to vector<16x128xbf16>
    %c0_19 = arith.constant 0 : index
    %c0_20 = arith.constant 0 : index
    %c0_21 = arith.constant 0 : index
    %45 = vector.load %arg6[%c0_19, %c0_20, %c0_21] : memref<1x16x128xbf16, #tpu.memory_space<vmem>>, vector<1x16x128xbf16>
    %46 = vector.shape_cast %45 : vector<1x16x128xbf16> to vector<16x128xbf16>
    %47 = vector.shape_cast %44 : vector<16x128xbf16> to vector<1x16x128xbf16>
    tpu.vector_store %arg6[%c0_19, %c0_20, %c0_21], %47 {strides = array<i32>} : memref<1x16x128xbf16, #tpu.memory_space<vmem>>, vector<1x16x128xbf16>,
    %cst_22 = arith.constant dense<0.000000e+00> : vector<128xf32>
    %48 = vector.multi_reduction <add>, %43, %cst_22 [0] : vector<16x128xf32> to vector<128xf32>
    %49 = vector.shape_cast %48 : vector<128xf32> to vector<1x128xf32>
    %50 = arith.mulf %43, %43 : vector<16x128xf32>
    %cst_23 = arith.constant dense<0.000000e+00> : vector<128xf32>
    %51 = vector.multi_reduction <add>, %50, %cst_23 [0] : vector<16x128xf32> to vector<128xf32>
    %52 = vector.shape_cast %51 : vector<128xf32> to vector<1x128xf32>
    %53 = tpu.concatenate %49, %52 in 0 : vector<1x128xf32>, vector<1x128xf32> -> vector<2x128xf32>
    %c0_24 = arith.constant 0 : index
    %c0_25 = arith.constant 0 : index
    %c0_26 = arith.constant 0 : index
    %c0_27 = arith.constant 0 : index
    %54 = vector.load %arg7[%c0_24, %c0_25, %c0_26, %c0_27] : memref<1x1x2x128xf32, #tpu.memory_space<vmem>>, vector<1x1x2x128xf32>
    %55 = vector.shape_cast %54 : vector<1x1x2x128xf32> to vector<2x128xf32>
    %56 = vector.shape_cast %53 : vector<2x128xf32> to vector<1x1x2x128xf32>
    tpu.vector_store %arg7[%c0_24, %c0_25, %c0_26, %c0_27], %56 {strides = array<i32>} : memref<1x1x2x128xf32, #tpu.memory_space<vmem>>, vector<1x1x2x128xf32>,
    return
  }
  func.func @transform_0(%arg0: i32, %arg1: i32) -> (i32, i32, i32) {
    %c0_i32 = arith.constant 0 : i32
    %c0_i32_0 = arith.constant 0 : i32
    return %arg0, %arg1, %c0_i32 : i32, i32, i32
  }
  func.func @transform_1(%arg0: i32, %arg1: i32) -> (i32, i32) {
    %c0_i32 = arith.constant 0 : i32
    %c0_i32_0 = arith.constant 0 : i32
    %c0_i32_1 = arith.constant 0 : i32
    return %c0_i32, %c0_i32_0 : i32, i32
  }
  func.func @transform_2(%arg0: i32, %arg1: i32) -> (i32, i32) {
    %c0_i32 = arith.constant 0 : i32
    %c0_i32_0 = arith.constant 0 : i32
    %c0_i32_1 = arith.constant 0 : i32
    return %c0_i32, %c0_i32_0 : i32, i32
  }
  func.func @transform_3(%arg0: i32, %arg1: i32) -> (i32, i32, i32) {
    %c0_i32 = arith.constant 0 : i32
    %c0_i32_0 = arith.constant 0 : i32
    %c0_i32_1 = arith.constant 0 : i32
    %c0_i32_2 = arith.constant 0 : i32
    return %c0_i32, %c0_i32_0, %c0_i32_1 : i32, i32, i32
  }
  func.func @transform_4(%arg0: i32, %arg1: i32) -> (i32, i32, i32) {
    %c0_i32 = arith.constant 0 : i32
    %c0_i32_0 = arith.constant 0 : i32
    return %arg0, %arg1, %c0_i32 : i32, i32, i32
  }
  func.func @transform_5(%arg0: i32, %arg1: i32) -> (i32, i32, i32, i32) {
    %c0_i32 = arith.constant 0 : i32
    %c0_i32_0 = arith.constant 0 : i32
    %c0_i32_1 = arith.constant 0 : i32
    return %arg0, %arg1, %c0_i32, %c0_i32_0 : i32, i32, i32, i32
  }
}

</mosaic_0001>

<bundles_post_ra>
// kernel: tile.29
= control target key start
LH: loop header
LB: loop body
LE: loop exit
PB: predicated region body
PF: predicated region fallthrough
CT: control target
= control target key end

     0   :  { %s131_s10 = smov 120   ;;  %s132_s11 = smov 104   ;;  %vm3_vm0 = vcmask 64512   ;;  %vm9_vm1 = vcmask 1048512   ;;  %vm15_vm2 = vcmask 982912   ;;  %vm21_vm3 = vcmask 917312   ;;  %s207_s0 = inlined_call_operand.vmem [shape: f32[16,8], index: 0, kind: input, shape index: {}]   ;;  %s208_s1 = inlined_call_operand.vmem [shape: f32[1,128], index: 1, kind: output, shape index: {}]  }
   0x1   :  { %v101_v0 = vld [vmem:[%s207_s0 + $0xf] sm:$0x1]   ;;  %v103_v1 = vld [vmem:[%s207_s0 + $0xd] sm:$0x1]   ;;  %v102_v2 = vld [vmem:[%s207_s0 + $0xe] sm:$0x1]  }
   0x2   :  { %7 = vrot.lane.b32.xlu0 %v101_v0, %s131_s10  ;;  %19 = vrot.lane.b32.xlu1 %v103_v1, %s132_s11  ;;  %v104_v3 = vld [vmem:[%s207_s0 + $0xc] sm:$0x1]   ;;  %s133_s16 = smov 112   ;;  %s134_s17 = smov 96   ;;  %v105_v4 = vld [vmem:[%s207_s0 + $0xb] sm:$0x1]  }
   0x3   :  { %v106_v5 = vld [vmem:[%s207_s0 + $0xa] sm:$0x1]   ;;  %v2_v6 = vld [vmem:[%s207_s0] sm:$0x1]   ;;  %s135_s24 = smov 88   ;;  %s136_s25 = smov 80  }
   0x4   :  { %4 = vst.msk [vmem:[#allocation0] sm:$0x1] %vm3_vm0, %v2_v6   ;;  %v107_v7 = vld [vmem:[%s207_s0 + $0x9] sm:$0x1]   ;;  %v108_v8 = vld [vmem:[%s207_s0 + $0x8] sm:$0x1]  }
   0x5   :  { %s137_s30 = smov 72   ;;  %s138_s2 = smov 64   ;;  %v109_v9 = vld [vmem:[%s207_s0 + $0x7] sm:$0x1]   ;;  %v110_v10 = vld [vmem:[%s207_s0 + $0x6] sm:$0x1]  }
   0x6   :  { %13 = vrot.lane.b32.xlu0 %v102_v2, %s133_s16  ;;  %25 = vrot.lane.b32.xlu1 %v104_v3, %s134_s17  ;;  %s139_s7 = smov 56   ;;  %s140_s8 = smov 48   ;;  %v111_v11 = vld [vmem:[%s207_s0 + $0x5] sm:$0x1]   ;;  %v112_v12 = vld [vmem:[%s207_s0 + $0x4] sm:$0x1]  }
   0x7   :  { %s141_s13 = smov 40   ;;  %s142_s14 = smov 32   ;;  %v113_v13 = vld [vmem:[%s207_s0 + $0x3] sm:$0x1]   ;;  %v114_v14 = vld [vmem:[%s207_s0 + $0x2] sm:$0x1]  }
   0x8   :  { %s143_s19 = smov 24   ;;  %s144_s20 = smov 16   ;;  %v115_v15 = vld [vmem:[%s207_s0 + $0x1] sm:$0x1]   ;;  %vm27_vm4 = vcmask 851712   ;;  %vm33_vm5 = vcmask 786112  }
   0x9   :  { %s145_s0 = smov 8   ;;  %vm39_vm6 = vcmask 720512   ;;  %vm45_vm7 = vcmask 654912   ;;  %vm51_vm8 = vcmask 589312   ;;  %vm57_vm9 = vcmask 523712  }
   0xa   :  { %31 = vrot.lane.b32.xlu0 %v105_v4, %s135_s24  ;;  %37 = vrot.lane.b32.xlu1 %v106_v5, %s136_s25  ;;  %vm63_vm10 = vcmask 458112   ;;  %vm69_vm11 = vcmask 392512   ;;  %vm75_vm12 = vcmask 326912   ;;  %vm81_vm13 = vcmask 261312  }
   0xb   :  { %vm87_vm14 = vcmask 195712   ;;  %vm93_vm15 = vcmask 130112  }
   0xe   :  { %43 = vrot.lane.b32.xlu0 %v107_v7, %s137_s30  ;;  %49 = vrot.lane.b32.xlu1 %v108_v8, %s138_s2 }
  0x12   :  { %55 = vrot.lane.b32.xlu0 %v109_v9, %s139_s7  ;;  %61 = vrot.lane.b32.xlu1 %v110_v10, %s140_s8 }
  0x16   :  { %67 = vrot.lane.b32.xlu0 %v111_v11, %s141_s13  ;;  %73 = vrot.lane.b32.xlu1 %v112_v12, %s142_s14 }
  0x1a   :  { %79 = vrot.lane.b32.xlu0 %v113_v13, %s143_s19  ;;  %85 = vrot.lane.b32.xlu1 %v114_v14, %s144_s20 }
  0x1e   :  { %91 = vrot.lane.b32.xlu0 %v115_v15, %s145_s0 }
  0x74   :  { %v8_v16 = vpop.permute.xlu0 %7   ;;  %v20_v17 = vpop.permute.xlu1 %19  }
  0x75   :  { %10 = vst.msk [vmem:[#allocation0] sm:$0x1] %vm9_vm1, %v8_v16  }
  0x78   :  { %v14_v18 = vpop.permute.xlu0 %13   ;;  %v26_v19 = vpop.permute.xlu1 %25  }
  0x79   :  { %16 = vst.msk [vmem:[#allocation0] sm:$0x1] %vm15_vm2, %v14_v18  }
  0x7a   :  { %22 = vst.msk [vmem:[#allocation0] sm:$0x1] %vm21_vm3, %v20_v17  }
  0x7b   :  { %28 = vst.msk [vmem:[#allocation0] sm:$0x1] %vm27_vm4, %v26_v19  }
  0x7c   :  { %v32_v20 = vpop.permute.xlu0 %31   ;;  %v38_v21 = vpop.permute.xlu1 %37  }
  0x7d   :  { %34 = vst.msk [vmem:[#allocation0] sm:$0x1] %vm33_vm5, %v32_v20  }
  0x7e   :  { %40 = vst.msk [vmem:[#allocation0] sm:$0x1] %vm39_vm6, %v38_v21  }
  0x80   :  { %v44_v22 = vpop.permute.xlu0 %43   ;;  %v50_v23 = vpop.permute.xlu1 %49  }
  0x81   :  { %46 = vst.msk [vmem:[#allocation0] sm:$0x1] %vm45_vm7, %v44_v22  }
  0x82   :  { %52 = vst.msk [vmem:[#allocation0] sm:$0x1] %vm51_vm8, %v50_v23  }
  0x84   :  { %v56_v24 = vpop.permute.xlu0 %55   ;;  %v62_v25 = vpop.permute.xlu1 %61  }
  0x85   :  { %58 = vst.msk [vmem:[#allocation0] sm:$0x1] %vm57_vm9, %v56_v24  }
  0x86   :  { %64 = vst.msk [vmem:[#allocation0] sm:$0x1] %vm63_vm10, %v62_v25  }
  0x88   :  { %v68_v26 = vpop.permute.xlu0 %67   ;;  %v74_v27 = vpop.permute.xlu1 %73  }
  0x89   :  { %70 = vst.msk [vmem:[#allocation0] sm:$0x1] %vm69_vm11, %v68_v26  }
  0x8a   :  { %76 = vst.msk [vmem:[#allocation0] sm:$0x1] %vm75_vm12, %v74_v27  }
  0x8c   :  { %v80_v28 = vpop.permute.xlu0 %79   ;;  %v86_v29 = vpop.permute.xlu1 %85  }
  0x8d   :  { %82 = vst.msk [vmem:[#allocation0] sm:$0x1] %vm81_vm13, %v80_v28  }
  0x8e   :  { %88 = vst.msk [vmem:[#allocation0] sm:$0x1] %vm87_vm14, %v86_v29  }
  0x90   :  { %v92_v30 = vpop.permute.xlu0 %91  }
  0x91   :  { %94 = vst.msk [vmem:[#allocation0] sm:$0x1] %vm93_vm15, %v92_v30  }
  0x98   :  { %v98_v31 = vld [vmem:[#allocation0] sm:$0x1] }
  0x99   :  { %100 = vst [vmem:[%s208_s1] sm:$0x1] %v98_v31 }

// kernel: tile.28
= control target key start
LH: loop header
LB: loop body
LE: loop exit
PB: predicated region body
PF: predicated region fallthrough
CT: control target
= control target key end

     0   :  { %s28_s0 = inlined_call_operand.vmem [shape: f32[8], index: 0, kind: input, shape index: {}]   ;;  %s29_s1 = inlined_call_operand.vmem [shape: f32[16,8], index: 1, kind: output, shape index: {}]  }
   0x1   :  { %v4_v0 = vld [vmem:[%s28_s0] ss:$0 sm:$0xff] }
   0x2   :  { %5 = vst [vmem:[%s29_s1] sm:$0xff] %v4_v0  ;;  %8 = vst [vmem:[%s29_s1 + $0x8] sm:$0xff] %v4_v0 }

// kernel: double_conv.3
= control target key start
LH: loop header
LB: loop body
LE: loop exit
PB: predicated region body
PF: predicated region fallthrough
CT: control target
= control target key end

     0   :  { %s1112_s18 = smov 0   ;;  %s1114_s19 = smov 0   ;;  %s1282_s0 = inlined_call_operand.vmem [shape: bf16[2,16,128], index: 0, kind: input, shape index: {}]   ;;  %s1283_s1 = inlined_call_operand.vmem [shape: f32[1,128], index: 1, kind: input, shape index: {}]   ;;  %s1284_s2 = inlined_call_operand.vmem [shape: f32[1,128], index: 2, kind: input, shape index: {}]   ;;  %s1285_s3 = inlined_call_operand.vmem [shape: bf16[3,128,128], index: 3, kind: input, shape index: {}]   ;;  %s1286_s4 = inlined_call_operand.vmem [shape: bf16[2,16,128], index: 4, kind: output, shape index: {0}]   ;;  %s1287_s5 = inlined_call_operand.vmem [shape: f32[2,1,2,128], index: 5, kind: output, shape index: {1}]  }
   0x1   :  { %s1116_s20 = smov 0  }
   0x2 LB: > { %s28_s21 = sadd.s32 1, %s1073_s19  ;;  %p820_p0 = scmp.ge.s32.totalorder %s1077_s20, 1  ;;  %s1077_s20 = sphi %s1116_s20, %s16_s20   ;;  %s1073_s19 = sphi %s1114_s19, %s1289_s19   ;;  %s1069_s18 = sphi %s1112_s18, %s1288_s18  }
   0x3   : > { %p30_p1 = scmp.ge.s32.totalorder %s28_s21, 2  ;;  %p213_p2 = scmp.lt.s32.totalorder %s1077_s20, 3 }
   0x5   : > { %s1291_s21 = smov (%p30_p1, %s28_s21), 0  ;;  %p214_p3 = pnand %p820_p0, %p213_p2 }
   0x6   : > { %v1031_v0 = vld [vmem:[%s1285_s3] sm:$0xff] (!%p214_p3)   ;;  %v1079_v1 = vmov (!%p214_p3), 0.0   ;;  %v1032_v2 = vld [vmem:[%s1285_s3 + $0x8] sm:$0xff] (!%p214_p3)   ;;  %vm1080_vm0 = vmmov (!%p214_p3), 0   ;;  %p257_p4 = scmp.lt.s32.totalorder (!%p214_p3), %s1069_s18, 1  ;;  %v1033_v3 = vld [vmem:[%s1285_s3 + $0x10] sm:$0xff] (!%p214_p3)   ;;  %v308_v17 = vlaneseq (!%p214_p3) }
   0x7   : > { %217 = sbr.rel (%p214_p3) target bundleno = 305 (0x131), region = 36  ;;  %958 = vmatprep.subr.bf16.mxu0 (!%p214_p3), %v1079_v1  ;;  %938 = vmatprep.subr.bf16.mxu1 (!%p214_p3), %v1079_v1  ;;  %v1039_v4 = vld [vmem:[%s1285_s3 + $0x40] sm:$0xff] (!%p214_p3)   ;;  %v1034_v7 = vld [vmem:[%s1285_s3 + $0x18] sm:$0xff] (!%p214_p3)   ;;  %v1041_v13 = vld [vmem:[%s1285_s3 + $0x48] sm:$0xff] (!%p214_p3)   ;;  %vm1081_vm3 = vmmov (!%p214_p3), 1   ;;  %vm685_vm8 = vcmask (!%p214_p3), 1040384  }
   0x8   : > { %959 = vmatpush3.bf16.msra.mxu0 (!%p214_p3), %v1031_v0  ;;  %974 = vmatprep.mubr.msk.bf16.mxu0 (!%p214_p3), %vm1080_vm0, %v1079_v1  ;;  %v826_v6 = vld [vmem:[%s1283_s1] ss:$0 sm:$0xff] (!%p214_p3)  ;;  %v1043_v18 = vld [vmem:[%s1285_s3 + $0x50] sm:$0xff] (!%p214_p3)   ;;  %v1036_v20 = vld [vmem:[%s1285_s3 + $0x28] sm:$0xff] (!%p214_p3)   ;;  %v1187_v22 = vshrl.u32 (!%p214_p3), %v308_v17, 7 }
   0x9   : > { %960 = vmatprep.subr.bf16.mxu0 (!%p214_p3), %v1079_v1  ;;  %954 = vmatprep.mubr.msk.bf16.mxu1 (!%p214_p3), %vm1080_vm0, %v1079_v1  ;;  %v827_v10 = vld [vmem:[%s1284_s2] ss:$0 sm:$0xff] (!%p214_p3)  ;;  %v1045_v23 = vld [vmem:[%s1285_s3 + $0x58] sm:$0xff] (!%p214_p3)   ;;  %v1037_v24 = vld [vmem:[%s1285_s3 + $0x30] sm:$0xff] (!%p214_p3)  }
   0xa   : > { %939 = vmatpush3.bf16.msra.mxu1 (!%p214_p3), %v1039_v4  ;;  %v1035_v14 = vld [vmem:[%s1285_s3 + $0x20] sm:$0xff] (!%p214_p3)   ;;  %vm315_vm1 = vcmp.lt.s32.totalorder (!%p214_p3), %v1187_v22, 1  ;;  %v1038_v28 = vld [vmem:[%s1285_s3 + $0x38] sm:$0xff] (!%p214_p3)   ;;  %v1049_v31 = vld [vmem:[%s1285_s3 + $0x68] sm:$0xff] (!%p214_p3)   ;;  %vm909_vm2 = vcmp.ne.s32.totalorder (!%p214_p3), %v1187_v22, 0  ;;  %v310_v45 = vadd.s32 (!%p214_p3), 8, %v1187_v22 }
   0xb   : > { %940 = vmatprep.subr.bf16.mxu1 (!%p214_p3), %v1079_v1  ;;  %v1047_v27 = vld [vmem:[%s1285_s3 + $0x60] sm:$0xff] (!%p214_p3)   ;;  %vm861_vm4 = vmpackc.low (!%p214_p3), %vm1081_vm3, %vm909_vm2  ;;  %v1051_v34 = vld [vmem:[%s1285_s3 + $0x70] sm:$0xff] (!%p214_p3)   ;;  %vm328_vm5 = vcmp.lt.s32.totalorder (!%p214_p3), %v1187_v22, 7 }
   0xc   : > { %961 = vmatpush3.bf16.msra.mxu0 (!%p214_p3), %v1032_v2  ;;  %v1040_v33 = vld [vmem:[%s1285_s3 + $0x80] sm:$0xff] (!%p214_p3)   ;;  %v1042_v35 = vld [vmem:[%s1285_s3 + $0x88] sm:$0xff] (!%p214_p3)   ;;  %v1053_v36 = vld [vmem:[%s1285_s3 + $0x78] sm:$0xff] (!%p214_p3)   ;;  %vm910_vm6 = vcmp.ne.s32.totalorder (!%p214_p3), %v310_v45, 15 }
   0xd   : > { %962 = vmatprep.subr.bf16.mxu0 (!%p214_p3), %v1079_v1  ;;  %v1044_v38 = vld [vmem:[%s1285_s3 + $0x90] sm:$0xff] (!%p214_p3)   ;;  %v1046_v39 = vld [vmem:[%s1285_s3 + $0x98] sm:$0xff] (!%p214_p3)   ;;  %v1048_v40 = vld [vmem:[%s1285_s3 + $0xa0] sm:$0xff] (!%p214_p3)  }
   0xe   : > { %s1293_s18 = smov (!%p257_p4, %s1069_s18), 1  ;;  %941 = vmatpush3.bf16.msra.mxu1 %v1041_v13  ;;  %v1050_v41 = vld [vmem:[%s1285_s3 + $0xa8] sm:$0xff]   ;;  %v1052_v42 = vld [vmem:[%s1285_s3 + $0xb0] sm:$0xff]   ;;  %v1054_v46 = vld [vmem:[%s1285_s3 + $0xb8] sm:$0xff]  }
   0xf   : > { %s896_s28 = sshll.u32 %s1293_s18, 3  ;;  %942 = vmatprep.subr.bf16.mxu1 %v1079_v1  ;;  %vm889_vm7 = vmpackc.low %vm910_vm6, %vm1081_vm3  ;;  %s825_s16 = sshll.u32 %s1293_s18, 1 }
  0x10   : > { %s264_s6 = scalar_lea.vmem %s1282_s0, %s896_s28  ;;  %963 = vmatpush3.bf16.msra.mxu0 %v1033_v3  ;;  %s274_s15 = scalar_lea.vmem %s1286_s4, %s896_s28 }
  0x11   : > { %v901_v5 = vld [vmem:[%s264_s6] sm:$0xff]   ;;  %964 = vmatprep.subr.bf16.mxu0 %v1079_v1  ;;  %s282_s22 = scalar_lea.vmem %s1287_s5, %s825_s16 }
  0x12   : > { %v902_v8 = vunpack.c.l.bf16 %v901_v5  ;;  %v903_v9 = vunpack.c.h.bf16 %v901_v5  ;;  %943 = vmatpush3.bf16.msra.mxu1 %v1043_v18 }
  0x13   : > { %944 = vmatprep.subr.bf16.mxu1 %v1079_v1 }
  0x14   : > { %v296_v11 = vmul.f32 %v902_v8, %v826_v6  ;;  %v297_v12 = vmul.f32 %v903_v9, %v826_v6  ;;  %965 = vmatpush3.bf16.msra.mxu0 %v1034_v7 }
  0x15   : > { %966 = vmatprep.subr.bf16.mxu0 %v1079_v1 }
  0x16   : > { %v304_v15 = vadd.f32 %v827_v10, %v296_v11  ;;  %v305_v16 = vadd.f32 %v827_v10, %v297_v12  ;;  %945 = vmatpush3.bf16.msra.mxu1 %v1045_v23 }
  0x17   : > { %946 = vmatprep.subr.bf16.mxu1 %v1079_v1 }
  0x18   : > { %v1180_v19 = vmax.f32 %v304_v15, 0.0  ;;  %967 = vmatpush3.bf16.msra.mxu0 %v1035_v14  ;;  %v1185_v21 = vmax.f32 %v305_v16, 0.0 }
  0x19   : > { %968 = vmatprep.subr.bf16.mxu0 %v1079_v1 }
  0x1a   : > { %v313_v25 = vrot.slane %v1180_v19, 7  ;;  %v314_v26 = vrot.slane %v1185_v21, 7  ;;  %947 = vmatpush3.bf16.msra.mxu1 %v1047_v27  ;;  %v354_v37 = vpack.c.bf16 %v1185_v21, %v1180_v19  ;;  %v326_v43 = vrot.slane %v1180_v19, 1 }
  0x1b   : > { %948 = vmatprep.subr.bf16.mxu1 %v1079_v1  ;;  %v327_v44 = vrot.slane %v1185_v21, 1 }
  0x1c   : > { %969 = vmatpush3.bf16.msra.mxu0 %v1036_v20  ;;  %v316_v29 = vsel %vm315_vm1, %v313_v25, %v314_v26  ;;  %v317_v30 = vsel %vm315_vm1, %v314_v26, %v313_v25 }
  0x1d   : > { %970 = vmatprep.subr.bf16.mxu0 %v1079_v1  ;;  %v862_v32 = vpack.c.bf16 %v316_v29, %v317_v30  ;;  %v329_v47 = vsel %vm328_vm5, %v326_v43, %v327_v44  ;;  %v330_v48 = vsel %vm328_vm5, %v327_v44, %v326_v43 }
  0x1e   : > { %949 = vmatpush3.bf16.msra.mxu1 %v1049_v31  ;;  %v890_v49 = vpack.c.bf16 %v330_v48, %v329_v47 }
  0x1f   : > { %950 = vmatprep.subr.bf16.mxu1 %v1079_v1 }
  0x20   : > { %971 = vmatpush3.bf16.msra.mxu0 %v1037_v24 }
  0x21   : > { %972 = vmatprep.subr.bf16.mxu0 %v1079_v1 }
  0x22   : > { %951 = vmatpush3.bf16.msra.mxu1 %v1051_v34 }
  0x23   : > { %952 = vmatprep.subr.bf16.mxu1 %v1079_v1 }
  0x24   : > { %973 = vmatpush3.bf16.msra.mxu0 %v1038_v28 }
  0x25   : > { %978 = vmatprep.subr.bf16.mxu0 %v1079_v1 }
  0x26   : > { %953 = vmatpush3.bf16.msra.mxu1 %v1053_v36 }
  0x27   : > { %975 = vmatmul.mubr.msk.bf16.vlgmr.msra.gmra.mrb[0].mxu0 %vm861_vm4, %v862_v32 }
  0x28   : > { %979 = vmatpush3.bf16.msra.mxu0 %v1040_v33  ;;  %994 = vmatprep.mubr.msk.bf16.mxu0 %vm1080_vm0, %v1079_v1 }
  0x29   : > { %980 = vmatprep.subr.bf16.mxu0 %v1079_v1  ;;  %955 = vmatmul.mubr.bf16.vlgmr.msra.gmra.mrb[0].mxu1 %v354_v37 }
  0x2c   : > { %981 = vmatpush3.bf16.msra.mxu0 %v1042_v35 }
  0x2d   : > { %982 = vmatprep.subr.bf16.mxu0 %v1079_v1 }
  0x30   : > { %983 = vmatpush3.bf16.msra.mxu0 %v1044_v38 }
  0x31   : > { %984 = vmatprep.subr.bf16.mxu0 %v1079_v1 }
  0x34   : > { %985 = vmatpush3.bf16.msra.mxu0 %v1046_v39 }
  0x35   : > { %986 = vmatprep.subr.bf16.mxu0 %v1079_v1 }
  0x38   : > { %987 = vmatpush3.bf16.msra.mxu0 %v1048_v40 }
  0x39   : > { %988 = vmatprep.subr.bf16.mxu0 %v1079_v1 }
  0x3c   : > { %989 = vmatpush3.bf16.msra.mxu0 %v1050_v41 }
  0x3d   : > { %990 = vmatprep.subr.bf16.mxu0 %v1079_v1 }
  0x40   : > { %991 = vmatpush3.bf16.msra.mxu0 %v1052_v42 }
  0x41   : > { %992 = vmatprep.subr.bf16.mxu0 %v1079_v1 }
  0x44   : > { %993 = vmatpush3.bf16.msra.mxu0 %v1054_v46 }
  0x47   : > { %995 = vmatmul.mubr.msk.bf16.vlgmr.msra.gmra.mrb[0].mxu0 %vm889_vm7, %v890_v49 }
  0xfc   : > { %v454_v50 = vpop.f32.mrb[0].mxu1 }
  0xfd   : > { %v956_v51 = vpop.f32.mrb[1].mxu1 }
  0xfe   : > { %v457_v52 = vpop.f32.mrb[2].mxu1 }
  0xff   : > { %v957_v53 = vpop.f32.mrb[3].mxu1 }
 0x11a   : > { %v650_v54 = vpop.f32.mrb[0].mxu0 }
 0x11b   : > { %v998_v55 = vadd.f32 %v650_v54, %v454_v50  ;;  %v996_v56 = vpop.f32.mrb[1].mxu0 }
 0x11c   : > { %v653_v57 = vpop.f32.mrb[2].mxu0 }
 0x11d   : > { %v999_v58 = vadd.f32 %v653_v57, %v457_v52  ;;  %v997_v59 = vpop.f32.mrb[3].mxu0  ;;  %v676_v60 = vmul.f32 %v998_v55, %v998_v55 }
 0x11f   : > { %v907_v61 = vpack.c.bf16 %v999_v58, %v998_v55  ;;  %v669_v62 = vadd.f32 %v999_v58, %v998_v55  ;;  %v677_v63 = vmul.f32 %v999_v58, %v999_v58 }
 0x121   : > { %908 = vst [vmem:[%s274_s15] sm:$0xff] %v907_v61   ;;  %v670_v0 = vrot.slane %v669_v62, 4  ;;  %v678_v1 = vadd.f32 %v677_v63, %v676_v60 }
 0x123   : > { %v671_v2 = vadd.f32 %v670_v0, %v669_v62  ;;  %v679_v3 = vrot.slane %v678_v1, 4 }
 0x125   : > { %v672_v4 = vrot.slane %v671_v2, 2  ;;  %v680_v5 = vadd.f32 %v679_v3, %v678_v1 }
 0x127   : > { %v673_v6 = vadd.f32 %v672_v4, %v671_v2  ;;  %v681_v7 = vrot.slane %v680_v5, 2 }
 0x129   : > { %v674_v8 = vrot.slane %v673_v6, 1  ;;  %v682_v9 = vadd.f32 %v681_v7, %v680_v5 }
 0x12b   : > { %v683_v10 = vrot.slane %v682_v9, 1  ;;  %v675_v11 = vadd.f32 %v674_v8, %v673_v6 }
 0x12d   : > { %v684_v12 = vadd.f32 %v683_v10, %v682_v9 }
 0x12f   : > { %v686_v13 = vsel %vm685_vm8, %v675_v11, %v684_v12 }
 0x130   : > { %687 = vst [vmem:[%s282_s22] sm:$0x3] %v686_v13 }
 0x131 PF: > { %s16_s20 = sadd.s32 1, %s1077_s20   ;;  %s1288_s18 = smov %s1073_s19 }
 0x132   : > { %p13_p5 = scmp.ge.s32.totalorder %s16_s20, 4   ;;  %s1289_s19 = smov %s1291_s21 }
 0x134   :  { %15 = sbr.rel (!%p13_p5) target bundleno = 2 (0x2), region = 80 }

// kernel: double_conv.2
= control target key start
LH: loop header
LB: loop body
LE: loop exit
PB: predicated region body
PF: predicated region fallthrough
CT: control target
= control target key end

     0   :  { %s858_s12 = smov 0   ;;  %s860_s13 = smov 0   ;;  %s959_s0 = inlined_call_operand.vmem [shape: bf16[2,16,64], index: 0, kind: input, shape index: {}]   ;;  %s960_s1 = inlined_call_operand.vmem [shape: bf16[3,64,128], index: 1, kind: input, shape index: {}]   ;;  %s961_s2 = inlined_call_operand.vmem [shape: bf16[2,16,128], index: 2, kind: output, shape index: {0}]   ;;  %s962_s3 = inlined_call_operand.vmem [shape: f32[2,1,2,128], index: 3, kind: output, shape index: {1}]  }
   0x1   :  { %s862_s14 = smov 0  }
   0x2 LB: > { %s26_s15 = sadd.s32 1, %s830_s13  ;;  %p664_p0 = scmp.ge.s32.totalorder %s834_s14, 1  ;;  %s834_s14 = sphi %s862_s14, %s14_s14   ;;  %s830_s13 = sphi %s860_s13, %s964_s13   ;;  %s826_s12 = sphi %s858_s12, %s963_s12  }
   0x3   : > { %p28_p1 = scmp.ge.s32.totalorder %s26_s15, 2  ;;  %p163_p2 = scmp.lt.s32.totalorder %s834_s14, 3 }
   0x5   : > { %s966_s15 = smov (%p28_p1, %s26_s15), 0  ;;  %p164_p3 = pnand %p664_p0, %p163_p2 }
   0x6   : > { %v798_v0 = vld [vmem:[%s960_s1] sm:$0xff] (!%p164_p3)   ;;  %v836_v1 = vmov (!%p164_p3), 0.0   ;;  %v234_v2 = vlaneseq (!%p164_p3)  ;;  %v799_v3 = vld [vmem:[%s960_s1 + $0x8] sm:$0xff] (!%p164_p3)   ;;  %vm837_vm0 = vmmov (!%p164_p3), 0   ;;  %p203_p4 = scmp.lt.s32.totalorder (!%p164_p3), %s826_s12, 1  ;;  %v800_v5 = vld [vmem:[%s960_s1 + $0x10] sm:$0xff] (!%p164_p3)  }
   0x7   : > { %167 = sbr.rel (%p164_p3) target bundleno = 276 (0x114), region = 28  ;;  %742 = vmatprep.subr.bf16.mxu0 (!%p164_p3), %v836_v1  ;;  %730 = vmatprep.subr.bf16.mxu1 (!%p164_p3), %v836_v1  ;;  %v802_v4 = vld [vmem:[%s960_s1 + $0x20] sm:$0xff] (!%p164_p3)   ;;  %v804_v7 = vld [vmem:[%s960_s1 + $0x28] sm:$0xff] (!%p164_p3)   ;;  %v801_v9 = vld [vmem:[%s960_s1 + $0x18] sm:$0xff] (!%p164_p3)   ;;  %vm310_vm3 = vcmask (!%p164_p3), 523264   ;;  %vm529_vm6 = vcmask (!%p164_p3), 1040384  }
   0x8   : > { %743 = vmatpush3.bf16.msra.mxu0 (!%p164_p3), %v798_v0  ;;  %750 = vmatprep.mubr.msk.bf16.mxu0 (!%p164_p3), %vm837_vm0, %v836_v1  ;;  %v235_v6 = vshrl.u32 (!%p164_p3), %v234_v2, 7  ;;  %v806_v12 = vld [vmem:[%s960_s1 + $0x30] sm:$0xff] (!%p164_p3)   ;;  %v803_v18 = vld [vmem:[%s960_s1 + $0x40] sm:$0xff] (!%p164_p3)   ;;  %v808_v19 = vld [vmem:[%s960_s1 + $0x38] sm:$0xff] (!%p164_p3)  }
   0x9   : > { %744 = vmatprep.subr.bf16.mxu0 (!%p164_p3), %v836_v1  ;;  %738 = vmatprep.mubr.msk.bf16.mxu1 (!%p164_p3), %vm837_vm0, %v836_v1  ;;  %v805_v21 = vld [vmem:[%s960_s1 + $0x48] sm:$0xff] (!%p164_p3)   ;;  %v807_v25 = vld [vmem:[%s960_s1 + $0x50] sm:$0xff] (!%p164_p3)   ;;  %v810_v27 = vld [vmem:[%s960_s1 + $0x58] sm:$0xff] (!%p164_p3)  }
   0xa   : > { %731 = vmatpush3.bf16.msra.mxu1 (!%p164_p3), %v802_v4  ;;  %vm241_vm1 = vcmp.lt.s32.totalorder (!%p164_p3), %v235_v6, 1  ;;  %vm237_vm2 = vcmp.eq.s32.totalorder (!%p164_p3), %v235_v6, 0  ;;  %v236_v24 = vadd.s32 (!%p164_p3), 8, %v235_v6  ;;  %vm254_vm4 = vcmp.lt.s32.totalorder (!%p164_p3), %v235_v6, 7 }
   0xb   : > { %732 = vmatprep.subr.bf16.mxu1 (!%p164_p3), %v836_v1 }
   0xc   : > { %745 = vmatpush3.bf16.msra.mxu0 (!%p164_p3), %v799_v3  ;;  %vm251_vm5 = vcmp.eq.s32.totalorder (!%p164_p3), %v236_v24, 15 }
   0xd   : > { %746 = vmatprep.subr.bf16.mxu0 (!%p164_p3), %v836_v1 }
   0xe   : > { %s968_s12 = smov (!%p203_p4, %s826_s12), 1  ;;  %733 = vmatpush3.bf16.msra.mxu1 %v804_v7 }
   0xf   : > { %s706_s24 = sshll.u32 %s968_s12, 3  ;;  %734 = vmatprep.subr.bf16.mxu1 %v836_v1  ;;  %s669_s25 = sshll.u32 %s968_s12, 1 }
  0x10   : > { %s210_s29 = scalar_lea.vmem %s959_s0, %s706_s24  ;;  %747 = vmatpush3.bf16.msra.mxu0 %v800_v5  ;;  %s220_s23 = scalar_lea.vmem %s961_s2, %s706_s24 }
  0x11   : > { %v230_v8 = vld [vmem:[%s210_s29] sm:$0xff]   ;;  %748 = vmatprep.subr.bf16.mxu0 %v836_v1  ;;  %s228_s27 = scalar_lea.vmem %s962_s3, %s669_s25 }
  0x12   : > { %v232_v10 = vunpack.c.l.bf16 %v230_v8  ;;  %v233_v11 = vunpack.c.h.bf16 %v230_v8  ;;  %735 = vmatpush3.bf16.msra.mxu1 %v806_v12 }
  0x13   : > { %736 = vmatprep.subr.bf16.mxu1 %v836_v1 }
  0x14   : > { %v239_v13 = vrot.slane %v232_v10, 7  ;;  %v240_v14 = vrot.slane %v233_v11, 7  ;;  %749 = vmatpush3.bf16.msra.mxu0 %v801_v9  ;;  %v252_v22 = vrot.slane %v232_v10, 1  ;;  %v253_v23 = vrot.slane %v233_v11, 1 }
  0x15   : > { %754 = vmatprep.subr.bf16.mxu0 %v836_v1 }
  0x16   : > { %v242_v15 = vsel %vm241_vm1, %v239_v13, %v240_v14  ;;  %v243_v16 = vsel %vm241_vm1, %v240_v14, %v239_v13  ;;  %737 = vmatpush3.bf16.msra.mxu1 %v808_v19  ;;  %v256_v26 = vsel %vm254_vm4, %v253_v23, %v252_v22  ;;  %v255_v28 = vsel %vm254_vm4, %v252_v22, %v253_v23 }
  0x17   : > { %v248_v17 = vsel %vm237_vm2, 0.0, %v243_v16  ;;  %v262_v29 = vsel %vm251_vm5, 0.0, %v256_v26 }
  0x18   : > { %v263_v20 = vpack.c.bf16 %v242_v15, %v248_v17  ;;  %v423_v30 = vpack.c.bf16 %v262_v29, %v255_v28 }
  0x19   : > { %739 = vmatmul.mubr.msk.bf16.vlgmr.msra.gmra.mrb[0].mxu1 %vm310_vm3, %v230_v8 }
  0x1a   : > { %751 = vmatmul.mubr.msk.bf16.vlgmr.msra.gmra.mrb[0].mxu0 %vm310_vm3, %v263_v20 }
  0x1b   : > { %755 = vmatpush3.bf16.msra.mxu0 %v803_v18  ;;  %762 = vmatprep.mubr.msk.bf16.mxu0 %vm837_vm0, %v836_v1 }
  0x1c   : > { %756 = vmatprep.subr.bf16.mxu0 %v836_v1 }
  0x1f   : > { %757 = vmatpush3.bf16.msra.mxu0 %v805_v21 }
  0x20   : > { %758 = vmatprep.subr.bf16.mxu0 %v836_v1 }
  0x23   : > { %759 = vmatpush3.bf16.msra.mxu0 %v807_v25 }
  0x24   : > { %760 = vmatprep.subr.bf16.mxu0 %v836_v1 }
  0x27   : > { %761 = vmatpush3.bf16.msra.mxu0 %v810_v27 }
  0x2a   : > { %763 = vmatmul.mubr.msk.bf16.vlgmr.msra.gmra.mrb[0].mxu0 %vm310_vm3, %v423_v30 }
  0xec   : > { %v348_v31 = vpop.f32.mrb[0].mxu1 }
  0xed   : > { %v740_v32 = vpop.f32.mrb[1].mxu1 }
  0xee   : > { %v351_v33 = vpop.f32.mrb[2].mxu1 }
  0xef   : > { %v741_v34 = vpop.f32.mrb[3].mxu1 }
  0xfd   : > { %v494_v35 = vpop.f32.mrb[0].mxu0 }
  0xfe   : > { %v766_v36 = vadd.f32 %v494_v35, %v348_v31  ;;  %v764_v37 = vpop.f32.mrb[1].mxu0 }
  0xff   : > { %v497_v38 = vpop.f32.mrb[2].mxu0 }
 0x100   : > { %v767_v39 = vadd.f32 %v497_v38, %v351_v33  ;;  %v765_v40 = vpop.f32.mrb[3].mxu0  ;;  %v520_v41 = vmul.f32 %v766_v36, %v766_v36 }
 0x102   : > { %v713_v42 = vpack.c.bf16 %v767_v39, %v766_v36  ;;  %v513_v43 = vadd.f32 %v767_v39, %v766_v36  ;;  %v521_v44 = vmul.f32 %v767_v39, %v767_v39 }
 0x104   : > { %714 = vst [vmem:[%s220_s23] sm:$0xff] %v713_v42   ;;  %v514_v45 = vrot.slane %v513_v43, 4  ;;  %v522_v46 = vadd.f32 %v521_v44, %v520_v41 }
 0x106   : > { %v515_v47 = vadd.f32 %v514_v45, %v513_v43  ;;  %v523_v48 = vrot.slane %v522_v46, 4 }
 0x108   : > { %v516_v49 = vrot.slane %v515_v47, 2  ;;  %v524_v50 = vadd.f32 %v523_v48, %v522_v46 }
 0x10a   : > { %v517_v51 = vadd.f32 %v516_v49, %v515_v47  ;;  %v525_v52 = vrot.slane %v524_v50, 2 }
 0x10c   : > { %v518_v53 = vrot.slane %v517_v51, 1  ;;  %v526_v54 = vadd.f32 %v525_v52, %v524_v50 }
 0x10e   : > { %v527_v55 = vrot.slane %v526_v54, 1  ;;  %v519_v56 = vadd.f32 %v518_v53, %v517_v51 }
 0x110   : > { %v528_v57 = vadd.f32 %v527_v55, %v526_v54 }
 0x112   : > { %v530_v58 = vsel %vm529_vm6, %v519_v56, %v528_v57 }
 0x113   : > { %531 = vst [vmem:[%s228_s27] sm:$0x3] %v530_v58 }
 0x114 PF: > { %s14_s14 = sadd.s32 1, %s834_s14   ;;  %s963_s12 = smov %s830_s13 }
 0x115   : > { %p11_p5 = scmp.ge.s32.totalorder %s14_s14, 4   ;;  %s964_s13 = smov %s966_s15 }
 0x117   :  { %13 = sbr.rel (!%p11_p5) target bundleno = 2 (0x2), region = 72 }

</bundles_post_ra>
